<compile_context>
chip_gen: v7x
topology: tpu7x:2x2x1
jax: 0.10.0
libtpu: 0.0.40
codegen_flags: <defaults>
</compile_context>

<pallas_src>
import functools

import jax
import jax.numpy as jnp
from jax import lax
from jax.experimental import pallas as pl
from jax.experimental.pallas import tpu as pltpu


def _round_up(x, m):
    return ((x + m - 1) // m) * m


def _cparams(semantics, est_bytes):
    limit = None
    if est_bytes > 14 * (1 << 20):
        limit = min(int(est_bytes * 2), 64 * (1 << 20))
    return pltpu.CompilerParams(dimension_semantics=semantics,
                                vmem_limit_bytes=limit)


def _choose_prep_tile(Bp, D, C, block_prep, budget=8 * (1 << 20)):
    # ~row_bytes per row of double-buffered tiles: f32 feats + f32 preds
    # + bf16 normed out + small ce/label columns.
    row_bytes = 6 * D + 4 * C + 16
    opts = []
    for c in (block_prep, 1024, 512, 256, 128):
        if not c:
            continue
        c = min(int(c), Bp)
        if Bp % c == 0 and c % 8 == 0 and c not in opts:
            opts.append(c)
    if Bp not in opts:
        opts.append(Bp)
    opts = [t for t in opts if Bp // t >= 2] or opts     # >= 2 grid steps (v7x)
    for t in opts:
        if 2 * t * row_bytes <= budget:
            return t, 2 * t * row_bytes
    t = min(opts)
    return t, 2 * t * row_bytes


def _choose_tiles(Bp, D, block_m, block_n, budget=36 * (1 << 20)):
    """Pick (resident_rhs, tm, tn, est_vmem_bytes) for Kernel B."""
    def _divs(prefs):
        out = []
        for c in prefs:
            if not c:
                continue
            c = min(int(c), Bp)
            if Bp % c == 0 and c % 8 == 0 and c not in out:
                out.append(c)
        if Bp not in out:
            out.append(Bp)
        return out

    tm_opts = _divs((block_m, 512, 256, 128))
    tm_opts = [t for t in tm_opts if Bp // t >= 2] or tm_opts   # megacore (v7x)
    tn_opts = [t for t in _divs((block_n, 256, 512, 128))
               if t % 128 == 0 or t == Bp]                      # lane-legal

    rhs_bytes = Bp * D * 2                                      # bf16 slab
    resident_ok = rhs_bytes <= 16 * (1 << 20)
    best = None
    for resident in ((True, False) if resident_ok else (False,)):
        for tm in tm_opts:
            for tn in tn_opts:
                est = (2 * tm * D * 2                           # lhs (double buf)
                       + (2 * rhs_bytes if resident else 2 * tn * D * 2)
                       + 6 * tm * tn * 4                        # f32 tile temps
                       + 8 * tm * 4 + 4 * tn * 4)               # stats / labels
                cfg = (resident, tm, tn, est)
                if est <= budget:
                    return cfg
                if best is None or est < best[3]:
                    best = cfg
    return best


# ---------------------------------------------------------------------------
# Kernel A: normalize (+ fold sqrt(1/temp)) -> bf16, plus per-row cross entropy.
# ---------------------------------------------------------------------------
def _prep_kernel(scale_ref, feats_ref, preds_ref, lab_ref, normed_ref, ce_ref):
    feats = feats_ref[...].astype(jnp.float32)                  # (tma, D)
    norm = jnp.sqrt(jnp.sum(feats * feats, axis=-1, keepdims=True))
    inv_norm = 1.0 / jnp.maximum(norm, 1e-12)                   # F.normalize eps
    scale = scale_ref[0, 0]                                     # sqrt(1/temp)
    normed_ref[...] = (feats * (inv_norm * scale)).astype(normed_ref.dtype)

    # per-row -log_softmax(predicts)[row, target]
    preds = preds_ref[...].astype(jnp.float32)                  # (tma, C)
    p_max = jnp.max(preds, axis=-1, keepdims=True)
    shifted = preds - p_max
    lse = jnp.log(jnp.sum(jnp.exp(shifted), axis=-1, keepdims=True))
    lab = lab_ref[...]                                          # (tma, 1) int32
    class_ids = lax.broadcasted_iota(jnp.int32, preds.shape, 1)
    picked = jnp.sum(jnp.where(class_ids == lab, shifted, 0.0),
                     axis=-1, keepdims=True)
    ce_ref[...] = lse - picked                                  # (tma, 1)


# ---------------------------------------------------------------------------
# Kernel B: tiled nt_xent with online (flash-style) masked-softmax statistics.
# ---------------------------------------------------------------------------
def _supcon_tile_kernel(n_pad, rhs_resident, tn,
                        lhs_ref, rhs_ref, lab_col_ref, lab_row_ref,
                        s1_ref, logz_ref, m_ref, l_ref):
    i = pl.program_id(0)
    j = pl.program_id(1)
    tm = lhs_ref.shape[0]

    @pl.when(j == 0)
    def _init():
        m_ref[...] = jnp.full((tm, 1), -jnp.inf, jnp.float32)
        l_ref[...] = jnp.zeros((tm, 1), jnp.float32)
        s1_ref[...] = jnp.zeros((tm, 1), jnp.float32)

    if rhs_resident:
        start = pl.multiple_of(j * tn, tn)
        rhs = rhs_ref[pl.ds(start, tn), :]                      # (tn, D) slice
    else:
        rhs = rhs_ref[...]                                      # (tn, D) tile

    # (tm, D) x (tn, D)^T -> (tm, tn); bf16 inputs, f32 accumulation on the MXU.
    # 1/temp is already folded in (sqrt(1/temp) on each operand).
    sim = lax.dot_general(lhs_ref[...], rhs,
                          dimension_numbers=(((1,), (1,)), ((), ())),
                          preferred_element_type=jnp.float32)

    lab_eq = lab_col_ref[...] == lab_row_ref[...]               # (tm, tn) bool

    def _update(sim_t, mask):
        m_prev = m_ref[...]
        m_new = jnp.maximum(m_prev, jnp.max(sim_t, axis=1, keepdims=True))
        l_ref[...] = (l_ref[...] * jnp.exp(m_prev - m_new)
                      + jnp.sum(jnp.exp(sim_t - m_new), axis=1, keepdims=True))
        m_ref[...] = m_new
        s1_ref[...] += jnp.sum(jnp.where(mask, sim_t, 0.0),
                               axis=1, keepdims=True)

    # Only ~1 column tile per row strip touches the diagonal; gate the extra
    # eye/where work on it.
    hits_diag = jnp.logical_and(i * tm < (j + 1) * tn, j * tn < (i + 1) * tm)

    @pl.when(hits_diag)
    def _diag_tile():
        row_g = i * tm + lax.broadcasted_iota(jnp.int32, (tm, 1), 0)
        col_g = j * tn + lax.broadcasted_iota(jnp.int32, (1, tn), 1)
        eye = row_g == col_g
        _update(jnp.where(eye, 0.0, sim),                       # zero the diagonal
                jnp.logical_and(lab_eq, jnp.logical_not(eye)))  # exclude self

    @pl.when(jnp.logical_not(hits_diag))
    def _off_diag_tile():
        _update(sim, lab_eq)

    @pl.when(j == pl.num_programs(1) - 1)
    def _finalize():
        l_corr = l_ref[...]
        if n_pad:
            # Padded feature rows are exactly zero, so every padded column
            # contributed exp(0 - m) to l and never raised m (the zeroed diag
            # already guarantees m >= 0 for valid rows).  Remove analytically.
            l_corr = l_corr - jnp.float32(n_pad) * jnp.exp(-m_ref[...])
        logz_ref[...] = m_ref[...] + jnp.log(l_corr + 1e-12)


# ---------------------------------------------------------------------------
# Wrapper
# ---------------------------------------------------------------------------
def supcon_loss(cls_feats, predicts, targets, *, alpha, temp,
                compute_dtype=jnp.bfloat16,
                block_m=512, block_n=256, block_prep=None):
    """Pallas equivalent of SupConLoss.forward({'cls_feats','predicts'}, targets)."""
    B, D = cls_feats.shape
    C = predicts.shape[1]
    Bp = _round_up(B, 128)
    n_pad = Bp - B

    targets = targets.astype(jnp.int32)
    if n_pad:
        # Row padding only (no D / C padding), and only when B is unaligned.
        feats = jnp.zeros((Bp, D), cls_feats.dtype).at[:B].set(cls_feats)
        preds = jnp.zeros((Bp, C), predicts.dtype).at[:B].set(predicts)
        labels = jnp.full((Bp,), -1, jnp.int32).at[:B].set(targets)
    else:
        feats, preds, labels = cls_feats, predicts, targets

    lab_col = labels.reshape(Bp, 1)
    lab_row = labels.reshape(1, Bp)

    # sqrt(1/temp), folded into BOTH dot operands -> sim already divided by temp.
    scale = (1.0 / jnp.sqrt(jnp.asarray(temp, jnp.float32))).reshape(1, 1)

    # ---- Kernel A: normalize + per-row CE (single pass over rows) ----
    tma, est_a = _choose_prep_tile(Bp, D, C, block_prep)
    normed, ce_rows = pl.pallas_call(
        _prep_kernel,
        out_shape=(jax.ShapeDtypeStruct((Bp, D), compute_dtype),
                   jax.ShapeDtypeStruct((Bp, 1), jnp.float32)),
        grid=(Bp // tma,),
        in_specs=[
            pl.BlockSpec(memory_space=pltpu.MemorySpace.SMEM),   # scale scalar
            pl.BlockSpec((tma, D), lambda i: (i, 0)),            # cls_feats
            pl.BlockSpec((tma, C), lambda i: (i, 0)),            # predicts
            pl.BlockSpec((tma, 1), lambda i: (i, 0)),            # labels
        ],
        out_specs=(
            pl.BlockSpec((tma, D), lambda i: (i, 0)),
            pl.BlockSpec((tma, 1), lambda i: (i, 0)),
        ),
        compiler_params=_cparams(("parallel",), est_a),
    )(scale, feats, preds, lab_col)

    # ---- Kernel B: tiled contrastive statistics ----
    resident, tm, tn, est_b = _choose_tiles(Bp, D, block_m, block_n)
    if resident:
        rhs_spec = pl.BlockSpec((Bp, D), lambda i, j: (0, 0))    # VMEM-resident
    else:
        rhs_spec = pl.BlockSpec((tn, D), lambda i, j: (j, 0))    # streamed tiles

    kernel_b = functools.partial(_supcon_tile_kernel, n_pad, resident, tn)
    s1, logz = pl.pallas_call(
        kernel_b,
        out_shape=(jax.ShapeDtypeStruct((Bp, 1), jnp.float32),   # sum(mask*sim)
                   jax.ShapeDtypeStruct((Bp, 1), jnp.float32)),  # m + log(denom)
        grid=(Bp // tm, Bp // tn),
        in_specs=[
            pl.BlockSpec((tm, D), lambda i, j: (i, 0)),          # anchor rows
            rhs_spec,                                            # target rows
            pl.BlockSpec((tm, 1), lambda i, j: (i, 0)),          # labels (col view)
            pl.BlockSpec((1, tn), lambda i, j: (0, j)),          # labels (row view)
        ],
        out_specs=(
            pl.BlockSpec((tm, 1), lambda i, j: (i, 0)),
            pl.BlockSpec((tm, 1), lambda i, j: (i, 0)),
        ),
        scratch_shapes=[pltpu.VMEM((tm, 1), jnp.float32),        # running max
                        pltpu.VMEM((tm, 1), jnp.float32)],       # running exp-sum
        compiler_params=_cparams(("parallel", "arbitrary"), est_b),
    )(normed, normed, lab_col, lab_row)

    # Tiny O(B) final combine in plain JAX.
    counts = jnp.zeros((C,), jnp.float32).at[targets].add(1.0)
    n_pos = counts[targets] - 1.0                                # positives per row
    n_safe = jnp.where(n_pos == 0.0, 1.0, n_pos)
    # sum(mask*log_prob) == sum(mask*sim) - n * (row_max + log denom)
    pos = (s1[:B, 0] - n_pos * logz[:B, 0]) / n_safe
    cl = -jnp.mean(pos)
    ce = jnp.mean(ce_rows[:B, 0])
    return (1.0 - alpha) * ce + alpha * cl


# ---------------------------------------------------------------------------
# References
# ---------------------------------------------------------------------------
def supcon_loss_ref(cls_feats, predicts, targets, *, alpha, temp):
    """Pure-JAX f32 reference mirroring the PyTorch module exactly."""
    B = cls_feats.shape[0]
    normed = cls_feats / jnp.maximum(
        jnp.linalg.norm(cls_feats, axis=-1, keepdims=True), 1e-12)
    logp = jax.nn.log_softmax(predicts, axis=-1)
    ce = -jnp.mean(jnp.take_along_axis(logp, targets[:, None], axis=1))

    sim = (normed @ normed.T) / temp
    eye = jnp.eye(B, dtype=bool)
    mask = ((targets[:, None] == targets[None, :]) & ~eye).astype(jnp.float32)
    sim = jnp.where(eye, 0.0, sim)
    logits = sim - jnp.max(sim, axis=1, keepdims=True)
    exp_logits = jnp.exp(logits)
    log_prob = logits * mask - jnp.log(
        jnp.sum(exp_logits, axis=1, keepdims=True) + 1e-12)
    mask_sum = jnp.sum(mask, axis=1)
    mask_sum = jnp.where(mask_sum == 0, 1.0, mask_sum)
    pos = jnp.sum(mask * log_prob, axis=1) / mask_sum
    cl = -jnp.mean(pos)
    return (1.0 - alpha) * ce + alpha * cl


def supcon_loss_ref_bf16(cls_feats, predicts, targets, *, alpha, temp):
    """Reference mirroring the kernel's bf16 MXU path (tight-tolerance check)."""
    B = cls_feats.shape[0]
    f = cls_feats.astype(jnp.float32)
    norm = jnp.sqrt(jnp.sum(f * f, axis=-1, keepdims=True))
    scale = 1.0 / jnp.sqrt(jnp.asarray(temp, jnp.float32))
    nb = (f / jnp.maximum(norm, 1e-12) * scale).astype(jnp.bfloat16)
    sim = jnp.dot(nb, nb.T, preferred_element_type=jnp.float32)
    eye = jnp.eye(B, dtype=bool)
    sim = jnp.where(eye, 0.0, sim)
    mask = ((targets[:, None] == targets[None, :]) & ~eye).astype(jnp.float32)
    logits = sim - jnp.max(sim, axis=1, keepdims=True)
    log_denom = jnp.log(jnp.sum(jnp.exp(logits), axis=1) + 1e-12)
    n = jnp.sum(mask, axis=1)
    n_safe = jnp.where(n == 0, 1.0, n)
    pos = (jnp.sum(mask * logits, axis=1) - n * log_denom) / n_safe
    cl = -jnp.mean(pos)
    logp = jax.nn.log_softmax(predicts.astype(jnp.float32), axis=-1)
    ce = -jnp.mean(jnp.take_along_axis(logp, targets[:, None], axis=1))
    return (1.0 - alpha) * ce + alpha * cl


if __name__ == "__main__":
    B, D, C = 8, 32, 4          # batch, feature dim, num classes
    alpha, temp = 0.5, 0.1

    key = jax.random.PRNGKey(0)
    k1, k2, k3 = jax.random.split(key, 3)
    cls_feats = jax.random.normal(k1, (B, D), dtype=jnp.float32)
    predicts = jax.random.normal(k2, (B, C), dtype=jnp.float32)
    targets = jax.random.randint(k3, (B,), 0, C, dtype=jnp.int32)

    loss = supcon_loss(cls_feats, predicts, targets, alpha=alpha, temp=temp)
    loss = jax.block_until_ready(loss)

    ref_bf16 = supcon_loss_ref_bf16(cls_feats, predicts, targets,
                                    alpha=alpha, temp=temp)
    ref_f32 = supcon_loss_ref(cls_feats, predicts, targets,
                              alpha=alpha, temp=temp)
    assert jnp.isfinite(loss), loss
    assert jnp.allclose(loss, ref_bf16, rtol=1e-2, atol=1e-2), (loss, ref_bf16)
    assert jnp.allclose(loss, ref_f32, rtol=6e-2, atol=6e-2), (loss, ref_f32)

    print("KERNEL_OK")
</pallas_src>

<mosaic_0001>
module attributes {stable_mosaic.version = 11 : i64} {
  func.func @_prep_kernel(%arg0: i32, %arg1: memref<1x1xf32, #tpu.memory_space<smem>>, %arg2: memref<128x32xf32, #tpu.memory_space<vmem>>, %arg3: memref<128x4xf32, #tpu.memory_space<vmem>>, %arg4: memref<128x1xi32, #tpu.memory_space<vmem>>, %arg5: memref<128x32xbf16, #tpu.memory_space<vmem>>, %arg6: memref<128x1xf32, #tpu.memory_space<vmem>>) attributes {dimension_semantics = [#tpu.dimension_semantics<parallel>], iteration_bounds = array<i64: 1>, scalar_prefetch = 0 : i64, scratch_operands = 0 : i64, tpu.core_type = #tpu.core_type<tc>, window_params = [{transform_indices = @transform_0, window_bounds = array<i64: 1, 1>}, {transform_indices = @transform_1, window_bounds = array<i64: 128, 32>}, {transform_indices = @transform_2, window_bounds = array<i64: 128, 4>}, {transform_indices = @transform_3, window_bounds = array<i64: 128, 1>}, {transform_indices = @transform_4, window_bounds = array<i64: 128, 32>}, {transform_indices = @transform_5, window_bounds = array<i64: 128, 1>}]} {
    %c0 = arith.constant 0 : index
    %c0_0 = arith.constant 0 : index
    %0 = vector.load %arg2[%c0, %c0_0] : memref<128x32xf32, #tpu.memory_space<vmem>>, vector<128x32xf32>
    %1 = arith.mulf %0, %0 : vector<128x32xf32>
    %cst = arith.constant dense<0.000000e+00> : vector<128xf32>
    %2 = vector.multi_reduction <add>, %1, %cst [1] : vector<128x32xf32> to vector<128xf32>
    %3 = vector.shape_cast %2 : vector<128xf32> to vector<128x1xf32>
    %4 = math.sqrt %3 : vector<128x1xf32>
    %cst_1 = arith.constant 9.99999996E-13 : f32
    %5 = vector.broadcast %cst_1 : f32 to vector<128x1xf32>
    %6 = arith.maximumf %4, %5 : vector<128x1xf32>
    %cst_2 = arith.constant 1.000000e+00 : f32
    %7 = vector.broadcast %cst_2 : f32 to vector<128x1xf32>
    %8 = arith.divf %7, %6 : vector<128x1xf32>
    %c0_3 = arith.constant 0 : index
    %c0_4 = arith.constant 0 : index
    %9 = memref.load %arg1[%c0_3, %c0_4] : memref<1x1xf32, #tpu.memory_space<smem>>
    %10 = vector.broadcast %9 : f32 to vector<128x1xf32>
    %11 = arith.mulf %8, %10 : vector<128x1xf32>
    %12 = vector.broadcast %11 : vector<128x1xf32> to vector<128x32xf32>
    %13 = arith.mulf %0, %12 : vector<128x32xf32>
    %14 = arith.truncf %13 : vector<128x32xf32> to vector<128x32xbf16>
    %c0_5 = arith.constant 0 : index
    %c0_6 = arith.constant 0 : index
    %15 = vector.load %arg5[%c0_5, %c0_6] : memref<128x32xbf16, #tpu.memory_space<vmem>>, vector<128x32xbf16>
    tpu.vector_store %arg5[%c0_5, %c0_6], %14 {strides = array<i32>} : memref<128x32xbf16, #tpu.memory_space<vmem>>, vector<128x32xbf16>,
    %c0_7 = arith.constant 0 : index
    %c0_8 = arith.constant 0 : index
    %16 = vector.load %arg3[%c0_7, %c0_8] : memref<128x4xf32, #tpu.memory_space<vmem>>, vector<128x4xf32>
    %cst_9 = arith.constant dense<0xFF800000> : vector<128xf32>
    %17 = vector.multi_reduction <maximumf>, %16, %cst_9 [1] : vector<128x4xf32> to vector<128xf32>
    %18 = vector.shape_cast %17 : vector<128xf32> to vector<128x1xf32>
    %19 = vector.broadcast %18 : vector<128x1xf32> to vector<128x4xf32>
    %20 = arith.subf %16, %19 : vector<128x4xf32>
    %21 = math.exp %20 : vector<128x4xf32>
    %cst_10 = arith.constant dense<0.000000e+00> : vector<128xf32>
    %22 = vector.multi_reduction <add>, %21, %cst_10 [1] : vector<128x4xf32> to vector<128xf32>
    %23 = vector.shape_cast %22 : vector<128xf32> to vector<128x1xf32>
    %24 = math.log %23 : vector<128x1xf32>
    %c0_11 = arith.constant 0 : index
    %c0_12 = arith.constant 0 : index
    %25 = vector.load %arg4[%c0_11, %c0_12] : memref<128x1xi32, #tpu.memory_space<vmem>>, vector<128x1xi32>
    %26 = tpu.iota {dimensions = array<i32: 1>} : vector<128x4xi32>
    %27 = vector.broadcast %25 : vector<128x1xi32> to vector<128x4xi32>
    %28 = arith.cmpi eq, %26, %27 : vector<128x4xi32>
    %cst_13 = arith.constant 0.000000e+00 : f32
    %29 = vector.broadcast %cst_13 : f32 to vector<128x4xf32>
    %30 = arith.select %28, %20, %29 : vector<128x4xi1>, vector<128x4xf32>
    %cst_14 = arith.constant dense<0.000000e+00> : vector<128xf32>
    %31 = vector.multi_reduction <add>, %30, %cst_14 [1] : vector<128x4xf32> to vector<128xf32>
    %32 = vector.shape_cast %31 : vector<128xf32> to vector<128x1xf32>
    %33 = arith.subf %24, %32 : vector<128x1xf32>
    %c0_15 = arith.constant 0 : index
    %c0_16 = arith.constant 0 : index
    %34 = vector.load %arg6[%c0_15, %c0_16] : memref<128x1xf32, #tpu.memory_space<vmem>>, vector<128x1xf32>
    tpu.vector_store %arg6[%c0_15, %c0_16], %33 {strides = array<i32>} : memref<128x1xf32, #tpu.memory_space<vmem>>, vector<128x1xf32>,
    return
  }
  func.func @transform_0(%arg0: i32) -> (i32, i32) {
    %c0_i32 = arith.constant 0 : i32
    %c0_i32_0 = arith.constant 0 : i32
    %c0_i32_1 = arith.constant 0 : i32
    return %c0_i32, %c0_i32_0 : i32, i32
  }
  func.func @transform_1(%arg0: i32) -> (i32, i32) {
    %c0_i32 = arith.constant 0 : i32
    %c0_i32_0 = arith.constant 0 : i32
    return %arg0, %c0_i32 : i32, i32
  }
  func.func @transform_2(%arg0: i32) -> (i32, i32) {
    %c0_i32 = arith.constant 0 : i32
    %c0_i32_0 = arith.constant 0 : i32
    return %arg0, %c0_i32 : i32, i32
  }
  func.func @transform_3(%arg0: i32) -> (i32, i32) {
    %c0_i32 = arith.constant 0 : i32
    %c0_i32_0 = arith.constant 0 : i32
    return %arg0, %c0_i32 : i32, i32
  }
  func.func @transform_4(%arg0: i32) -> (i32, i32) {
    %c0_i32 = arith.constant 0 : i32
    %c0_i32_0 = arith.constant 0 : i32
    return %arg0, %c0_i32 : i32, i32
  }
  func.func @transform_5(%arg0: i32) -> (i32, i32) {
    %c0_i32 = arith.constant 0 : i32
    %c0_i32_0 = arith.constant 0 : i32
    return %arg0, %c0_i32 : i32, i32
  }
}

</mosaic_0001>

<bundles_post_ra>
// kernel: tpu_custom_call.1
= control target key start
LH: loop header
LB: loop body
LE: loop exit
PB: predicated region body
PF: predicated region fallthrough
CT: control target
= control target key end

     0   :  { %vm52_vm0 = vcmask 261120   ;;  %v919_v3 = vmov 0   ;;  %vm392_vm1 = vcmask 31744   ;;  %s1703_s1 = inlined_call_operand.vmem [shape: f32[128,32], index: 1, kind: input, shape index: {}]   ;;  %s1704_s2 = inlined_call_operand.vmem [shape: f32[128,4], index: 2, kind: input, shape index: {}]   ;;  %s1705_s3 = inlined_call_operand.vmem [shape: s32[128,1], index: 3, kind: input, shape index: {}]   ;;  %s1706_s0 = inlined_call_operand.<no memory space> [shape: f32[1,1], index: 0, kind: input, shape index: {}]   ;;  %s1707_s4 = inlined_call_operand.vmem [shape: bf16[128,32], index: 4, kind: output, shape index: {0}]   ;;  %s1708_s5 = inlined_call_operand.vmem [shape: f32[128,1], index: 5, kind: output, shape index: {1}]  }
   0x1   :  { %v953_v0 = vld [vmem:[%s1703_s1 + $0x10] sm:$0xff]  ;;  %v958_v1 = vld [vmem:[%s1703_s1] sm:$0xff]  ;;  %v963_v2 = vld [vmem:[%s1703_s1 + $0x18] sm:$0xff]  ;;  %789 = vset.pattern.permute.xlu1 %v919_v3  ;;  %790 = vset.pattern.permute.xlu0 %v919_v3 }
   0x2   :  { %v38_v4 = vmul.f32 %v953_v0, %v953_v0  ;;  %v36_v5 = vmul.f32 %v958_v1, %v958_v1  ;;  %v39_v6 = vmul.f32 %v963_v2, %v963_v2  ;;  %v974_v7 = vld [vmem:[%s1703_s1 + $0x8] sm:$0xff]  ;;  %v986_v10 = vld [vmem:[%s1703_s1 + $0x20] sm:$0xff]  ;;  %v999_v17 = vld [vmem:[%s1703_s1 + $0x38] sm:$0xff] }
   0x3   :  { %v37_v8 = vmul.f32 %v974_v7, %v974_v7  ;;  %v981_v9 = vld [vmem:[%s1703_s1 + $0x28] sm:$0xff]  ;;  %v40_v16 = vmul.f32 %v986_v10, %v986_v10  ;;  %v1004_v18 = vld [vmem:[%s1703_s1 + $0x30] sm:$0xff]  ;;  %v43_v21 = vmul.f32 %v999_v17, %v999_v17  ;;  %v1020_v24 = vld [vmem:[%s1703_s1 + $0x40] sm:$0xff] }
   0x4   :  { %v59_v11 = vsel %vm52_vm0, %v38_v4, 0.0  ;;  %v53_v12 = vsel %vm52_vm0, %v36_v5, 0.0  ;;  %v62_v13 = vsel %vm52_vm0, %v39_v6, 0.0  ;;  %v41_v15 = vmul.f32 %v981_v9, %v981_v9  ;;  %v1015_v23 = vld [vmem:[%s1703_s1 + $0x48] sm:$0xff]  ;;  %v1031_v29 = vld [vmem:[%s1703_s1 + $0x58] sm:$0xff]  ;;  %v1036_v30 = vld [vmem:[%s1703_s1 + $0x50] sm:$0xff] }
   0x5   :  { %60 = vadd.xlane.f32.xlu1 %v59_v11  ;;  %54 = vadd.xlane.f32.xlu0 %v53_v12  ;;  %v56_v14 = vsel %vm52_vm0, %v37_v8, 0.0  ;;  %v65_v20 = vsel %vm52_vm0, %v40_v16, 0.0  ;;  %v42_v22 = vmul.f32 %v1004_v18, %v1004_v18  ;;  %v74_v25 = vsel %vm52_vm0, %v43_v21, 0.0  ;;  %v1047_v35 = vld [vmem:[%s1703_s1 + $0x68] sm:$0xff]  ;;  %v1052_v36 = vld [vmem:[%s1703_s1 + $0x60] sm:$0xff]  ;;  %v1063_v41 = vld [vmem:[%s1703_s1 + $0x78] sm:$0xff] }
   0x6   :  { %v68_v19 = vsel %vm52_vm0, %v41_v15, 0.0  ;;  %v45_v27 = vmul.f32 %v1015_v23, %v1015_v23  ;;  %v44_v28 = vmul.f32 %v1020_v24, %v1020_v24  ;;  %v47_v33 = vmul.f32 %v1031_v29, %v1031_v29  ;;  %v1068_v42 = vld [vmem:[%s1703_s1 + $0x70] sm:$0xff]  ;;  %v1081_v49 = vld [vmem:[%s1704_s2 + $0x8] sm:$0xff]  ;;  %v1086_v50 = vld [vmem:[%s1704_s2] sm:$0xff] }
   0x7   :  { %v71_v26 = vsel %vm52_vm0, %v42_v22, 0.0  ;;  %v46_v34 = vmul.f32 %v1036_v30, %v1036_v30  ;;  %v49_v39 = vmul.f32 %v1047_v35, %v1047_v35  ;;  %v48_v40 = vmul.f32 %v1052_v36, %v1052_v36  ;;  %v1095_v53 = vld [vmem:[%s1704_s2 + $0x18] sm:$0xff]  ;;  %v1100_v54 = vld [vmem:[%s1704_s2 + $0x10] sm:$0xff]  ;;  %v1109_v57 = vld [vmem:[%s1704_s2 + $0x28] sm:$0xff] }
   0x8   :  { %v80_v31 = vsel %vm52_vm0, %v45_v27, 0.0  ;;  %v77_v32 = vsel %vm52_vm0, %v44_v28, 0.0  ;;  %v86_v37 = vsel %vm52_vm0, %v47_v33, 0.0  ;;  %v51_v45 = vmul.f32 %v1063_v41, %v1063_v41  ;;  %v1114_v58 = vld [vmem:[%s1704_s2 + $0x20] sm:$0xff]  ;;  %v1123_v61 = vld [vmem:[%s1704_s2 + $0x38] sm:$0xff]  ;;  %v1128_v62 = vld [vmem:[%s1704_s2 + $0x30] sm:$0xff] }
   0x9   :  { %63 = vadd.xlane.f32.xlu1 %v62_v13  ;;  %57 = vadd.xlane.f32.xlu0 %v56_v14  ;;  %v83_v38 = vsel %vm52_vm0, %v46_v34, 0.0  ;;  %v92_v43 = vsel %vm52_vm0, %v49_v39, 0.0  ;;  %v89_v44 = vsel %vm52_vm0, %v48_v40, 0.0  ;;  %v50_v46 = vmul.f32 %v1068_v42, %v1068_v42  ;;  %v1137_v4 = vld [vmem:[%s1704_s2 + $0x48] sm:$0xff]  ;;  %v1142_v5 = vld [vmem:[%s1704_s2 + $0x40] sm:$0xff]  ;;  %v1151_v11 = vld [vmem:[%s1704_s2 + $0x58] sm:$0xff] }
   0xa   :  { %v98_v47 = vsel %vm52_vm0, %v51_v45, 0.0  ;;  %v396_v51 = vsel %vm392_vm1, %v1081_v49, -inf  ;;  %v393_v52 = vsel %vm392_vm1, %v1086_v50, -inf  ;;  %v402_v55 = vsel %vm392_vm1, %v1095_v53, -inf  ;;  %v1156_v12 = vld [vmem:[%s1704_s2 + $0x50] sm:$0xff]  ;;  %v1165_v15 = vld [vmem:[%s1704_s2 + $0x68] sm:$0xff] }
   0xb   :  { %v95_v48 = vsel %vm52_vm0, %v50_v46, 0.0  ;;  %v399_v56 = vsel %vm392_vm1, %v1100_v54, -inf  ;;  %v408_v59 = vsel %vm392_vm1, %v1109_v57, -inf  ;;  %v405_v60 = vsel %vm392_vm1, %v1114_v58, -inf  ;;  %v1170_v16 = vld [vmem:[%s1704_s2 + $0x60] sm:$0xff]  ;;  %v1179_v21 = vld [vmem:[%s1704_s2 + $0x78] sm:$0xff] }
   0xc   :  { %v414_v63 = vsel %vm392_vm1, %v1123_v61, -inf  ;;  %v411_v3 = vsel %vm392_vm1, %v1128_v62, -inf  ;;  %v420_v6 = vsel %vm392_vm1, %v1137_v4, -inf  ;;  %v417_v8 = vsel %vm392_vm1, %v1142_v5, -inf  ;;  %v1184_v22 = vld [vmem:[%s1704_s2 + $0x70] sm:$0xff]  ;;  %v569_v27 = vld [vmem:[%s1705_s3] sm:$0xff] }
   0xd   :  { %69 = vadd.xlane.f32.xlu1 %v68_v19  ;;  %66 = vadd.xlane.f32.xlu0 %v65_v20  ;;  %v426_v13 = vsel %vm392_vm1, %v1151_v11, -inf  ;;  %v423_v14 = vsel %vm392_vm1, %v1156_v12, -inf  ;;  %v432_v19 = vsel %vm392_vm1, %v1165_v15, -inf  ;;  %v429_v20 = vsel %vm392_vm1, %v1170_v16, -inf  ;;  %v571_v28 = vld [vmem:[%s1705_s3 + $0x10] sm:$0xff]  ;;  %v573_v34 = vld [vmem:[%s1705_s3 + $0x20] sm:$0xff] }
   0xe   :  { %v579_v33 = vld [vmem:[%s1705_s3 + $0x50] sm:$0xff]  ;;  %v578_v45 = vld [vmem:[%s1705_s3 + $0x48] sm:$0xff]  ;;  %v580_v46 = vld [vmem:[%s1705_s3 + $0x58] sm:$0xff] }
   0xf   :  { %v583_v39 = vld [vmem:[%s1705_s3 + $0x70] sm:$0xff] }
  0x10   :  { %v575_v40 = vld [vmem:[%s1705_s3 + $0x30] sm:$0xff] }
  0x11   :  { %75 = vadd.xlane.f32.xlu1 %v74_v25  ;;  %72 = vadd.xlane.f32.xlu0 %v71_v26  ;;  %v438_v25 = vsel %vm392_vm1, %v1179_v21, -inf  ;;  %v435_v26 = vsel %vm392_vm1, %v1184_v22, -inf }
  0x15   :  { %81 = vadd.xlane.f32.xlu1 %v80_v31  ;;  %78 = vadd.xlane.f32.xlu0 %v77_v32  ;;  %v570_v31 = vld [vmem:[%s1705_s3 + $0x8] sm:$0xff]  ;;  %v572_v32 = vld [vmem:[%s1705_s3 + $0x18] sm:$0xff] }
  0x19   :  { %87 = vadd.xlane.f32.xlu1 %v86_v37  ;;  %84 = vadd.xlane.f32.xlu0 %v83_v38  ;;  %v581_v37 = vld [vmem:[%s1705_s3 + $0x60] sm:$0xff]  ;;  %v574_v38 = vld [vmem:[%s1705_s3 + $0x28] sm:$0xff] }
  0x1d   :  { %93 = vadd.xlane.f32.xlu1 %v92_v43  ;;  %90 = vadd.xlane.f32.xlu0 %v89_v44  ;;  %v576_v43 = vld [vmem:[%s1705_s3 + $0x38] sm:$0xff]  ;;  %v577_v44 = vld [vmem:[%s1705_s3 + $0x40] sm:$0xff] }
  0x21   :  { %99 = vadd.xlane.f32.xlu1 %v98_v47  ;;  %96 = vadd.xlane.f32.xlu0 %v95_v48  ;;  %v582_v47 = vld [vmem:[%s1705_s3 + $0x68] sm:$0xff]  ;;  %v584_v48 = vld [vmem:[%s1705_s3 + $0x78] sm:$0xff] }
  0x25   :  { %397 = vmax.xlane.f32.xlu1 %v396_v51  ;;  %394 = vmax.xlane.f32.xlu0 %v393_v52 }
  0x29   :  { %403 = vmax.xlane.f32.xlu1 %v402_v55  ;;  %400 = vmax.xlane.f32.xlu0 %v399_v56 }
  0x2d   :  { %409 = vmax.xlane.f32.xlu1 %v408_v59  ;;  %406 = vmax.xlane.f32.xlu0 %v405_v60 }
  0x31   :  { %415 = vmax.xlane.f32.xlu1 %v414_v63  ;;  %412 = vmax.xlane.f32.xlu0 %v411_v3  ;;  %v1245_v63 = vstv %s1706_s0 }
  0x35   :  { %421 = vmax.xlane.f32.xlu1 %v420_v6  ;;  %418 = vmax.xlane.f32.xlu0 %v417_v8 }
  0x39   :  { %427 = vmax.xlane.f32.xlu1 %v426_v13  ;;  %424 = vmax.xlane.f32.xlu0 %v423_v14 }
  0x3d   :  { %433 = vmax.xlane.f32.xlu1 %v432_v19  ;;  %430 = vmax.xlane.f32.xlu0 %v429_v20 }
  0x41   :  { %439 = vmax.xlane.f32.xlu1 %v438_v25  ;;  %436 = vmax.xlane.f32.xlu0 %v435_v26 }
  0x52   :  { %588 = vperm.xlu1 %789, %v569_v27  }
  0x56   :  { %594 = vperm.xlu1 %789, %v571_v28  }
  0x57   :  { %591 = vperm.xlu0 %790, %v570_v31  }
  0x5a   :  { %597 = vperm.xlu1 %789, %v572_v32  }
  0x5b   :  { %618 = vperm.xlu0 %790, %v579_v33  }
  0x5e   :  { %600 = vperm.xlu1 %789, %v573_v34  }
  0x5f   :  { %624 = vperm.xlu0 %790, %v581_v37  }
  0x62   :  { %603 = vperm.xlu1 %789, %v574_v38  }
  0x63   :  { %630 = vperm.xlu0 %790, %v583_v39  }
  0x66   :  { %606 = vperm.xlu1 %789, %v575_v40  }
  0x6a   :  { %609 = vperm.xlu1 %789, %v576_v43  }
  0x6e   :  { %612 = vperm.xlu1 %789, %v577_v44  }
  0x72   :  { %615 = vperm.xlu1 %789, %v578_v45  }
  0x76   :  { %621 = vperm.xlu1 %789, %v580_v46  }
  0x7a   :  { %627 = vperm.xlu1 %789, %v582_v47  }
  0x7e   :  { %633 = vperm.xlu1 %789, %v584_v48  }
  0x92   :  { %v61_v51 = vpop.xlane.xlu1 %60  ;;  %v55_v52 = vpop.xlane.xlu0 %54 }
  0x93   :  { %791 = vrsqrt.f32 %v61_v51  ;;  %vm117_vm2 = vcmp.eq.f32.partialorder %v61_v51, inf  ;;  %vm119_vm3 = vcmp.eq.f32.partialorder %v61_v51, 0.0  ;;  %v120_v3 = vand.u32 2147483648, %v61_v51 }
  0x94   :  { %793 = vrsqrt.f32 %v55_v52  ;;  %vm103_vm4 = vcmp.eq.f32.partialorder %v55_v52, inf  ;;  %vm105_vm5 = vcmp.eq.f32.partialorder %v55_v52, 0.0  ;;  %v106_v8 = vand.u32 2147483648, %v55_v52 }
  0x96   :  { %v64_v55 = vpop.xlane.xlu1 %63  ;;  %v58_v56 = vpop.xlane.xlu0 %57 }
  0x97   :  { %795 = vrsqrt.f32 %v64_v55  ;;  %vm124_vm6 = vcmp.eq.f32.partialorder %v64_v55, inf  ;;  %vm126_vm7 = vcmp.eq.f32.partialorder %v64_v55, 0.0  ;;  %v127_v19 = vand.u32 2147483648, %v64_v55 }
  0x98   :  { %797 = vrsqrt.f32 %v58_v56  ;;  %vm110_vm8 = vcmp.eq.f32.partialorder %v58_v56, inf  ;;  %vm112_vm9 = vcmp.eq.f32.partialorder %v58_v56, 0.0  ;;  %v113_v27 = vand.u32 2147483648, %v58_v56 }
  0x9a   :  { %v1238_v59 = vpop.xlane.xlu1 %69  ;;  %v1240_v60 = vpop.xlane.xlu0 %66 }
  0x9b   :  { %799 = vrsqrt.f32 %v1238_v59  ;;  %vm138_vm10 = vcmp.eq.f32.partialorder %v1238_v59, inf  ;;  %vm140_vm11 = vcmp.eq.f32.partialorder %v1238_v59, 0.0  ;;  %v141_v34 = vand.u32 2147483648, %v1238_v59 }
  0x9c   :  { %801 = vrsqrt.f32 %v1240_v60  ;;  %vm131_vm12 = vcmp.eq.f32.partialorder %v1240_v60, inf  ;;  %vm133_vm13 = vcmp.eq.f32.partialorder %v1240_v60, 0.0  ;;  %v134_v47 = vand.u32 2147483648, %v1240_v60 }
  0x9d   :  { %v792_v6 = vpop.eup %791 }
  0x9e   :  { %v794_v13 = vpop.eup %793  ;;  %v116_v14 = vmul.f32 %v792_v6, %v61_v51  ;;  %v1249_v20 = vpop.xlane.xlu1 %75 }
  0x9f   :  { %v1251_v25 = vpop.xlane.xlu0 %72  ;;  %v102_v26 = vmul.f32 %v794_v13, %v55_v52  ;;  %803 = vrsqrt.f32 %v1249_v20  ;;  %vm152_vm14 = vcmp.eq.f32.partialorder %v1249_v20, inf  ;;  %vm154_vm15 = vcmp.eq.f32.partialorder %v1249_v20, 0.0 }
  0xa0   :  { %v118_v28 = vsel %vm117_vm2, %v61_v51, %v116_v14  ;;  %805 = vrsqrt.f32 %v1251_v25  ;;  %v155_v6 = vand.u32 2147483648, %v1249_v20  ;;  %vm145_vm0 = vcmp.eq.f32.partialorder %v1251_v25, inf }
  0xa1   :  { %v796_v31 = vpop.eup %795  ;;  %v121_v32 = vsel %vm119_vm3, %v120_v3, %v118_v28  ;;  %v104_v33 = vsel %vm103_vm4, %v55_v52, %v102_v26  ;;  %vm147_vm2 = vcmp.eq.f32.partialorder %v1251_v25, 0.0 }
  0xa2   :  { %v798_v37 = vpop.eup %797  ;;  %v215_v38 = vmax.f32 %v121_v32, 1e-12  ;;  %v107_v39 = vsel %vm105_vm5, %v106_v8, %v104_v33  ;;  %v123_v40 = vmul.f32 %v796_v31, %v64_v55  ;;  %v1264_v43 = vpop.xlane.xlu1 %81  ;;  %vm359_vm5 = vcmask 257024  }
  0xa3   :  { %v1266_v44 = vpop.xlane.xlu0 %78  ;;  %v213_v45 = vmax.f32 %v107_v39, 1e-12  ;;  %v109_v46 = vmul.f32 %v798_v37, %v58_v56  ;;  %807 = vrsqrt.f32 %v1264_v43  ;;  %vm166_vm3 = vcmp.eq.f32.partialorder %v1264_v43, inf }
  0xa4   :  { %809 = vrcp.f32 %v215_v38  ;;  %v125_v48 = vsel %vm124_vm6, %v64_v55, %v123_v40  ;;  %vm168_vm4 = vcmp.eq.f32.partialorder %v1264_v43, 0.0  ;;  %vm159_vm6 = vcmp.eq.f32.partialorder %v1266_v44, inf }
  0xa5   :  { %v800_v51 = vpop.eup %799  ;;  %811 = vrcp.f32 %v213_v45  ;;  %v128_v52 = vsel %vm126_vm7, %v127_v19, %v125_v48  ;;  %v111_v3 = vsel %vm110_vm8, %v58_v56, %v109_v46  ;;  %v148_v19 = vand.u32 2147483648, %v1251_v25 }
  0xa6   :  { %v802_v8 = vpop.eup %801  ;;  %v216_v13 = vmax.f32 %v128_v52, 1e-12  ;;  %v114_v14 = vsel %vm112_vm9, %v113_v27, %v111_v3  ;;  %v137_v26 = vmul.f32 %v800_v51, %v1238_v59  ;;  %813 = vrsqrt.f32 %v1266_v44  ;;  %v1279_v28 = vpop.xlane.xlu1 %87 }
  0xa7   :  { %v1281_v31 = vpop.xlane.xlu0 %84  ;;  %v214_v32 = vmax.f32 %v114_v14, 1e-12  ;;  %v130_v55 = vmul.f32 %v802_v8, %v1240_v60  ;;  %v169_v51 = vand.u32 2147483648, %v1264_v43  ;;  %vm161_vm7 = vcmp.eq.f32.partialorder %v1266_v44, 0.0 }
  0xa8   :  { %815 = vrcp.f32 %v216_v13  ;;  %v139_v56 = vsel %vm138_vm10, %v1238_v59, %v137_v26  ;;  %v162_v8 = vand.u32 2147483648, %v1266_v44  ;;  %vm180_vm8 = vcmp.eq.f32.partialorder %v1279_v28, inf }
  0xa9   :  { %v804_v27 = vpop.eup %803  ;;  %817 = vrcp.f32 %v214_v32  ;;  %v142_v33 = vsel %vm140_vm11, %v141_v34, %v139_v56  ;;  %v132_v37 = vsel %vm131_vm12, %v1240_v60, %v130_v55  ;;  %vm182_vm9 = vcmp.eq.f32.partialorder %v1279_v28, 0.0 }
  0xaa   :  { %v806_v38 = vpop.eup %805  ;;  %v218_v39 = vmax.f32 %v142_v33, 1e-12  ;;  %v135_v40 = vsel %vm133_vm13, %v134_v47, %v132_v37  ;;  %v151_v45 = vmul.f32 %v804_v27, %v1249_v20  ;;  %819 = vrsqrt.f32 %v1279_v28  ;;  %v1301_v46 = vpop.xlane.xlu1 %93 }
  0xab   :  { %v1303_v59 = vpop.xlane.xlu0 %90  ;;  %v217_v34 = vmax.f32 %v135_v40, 1e-12  ;;  %v144_v48 = vmul.f32 %v806_v38, %v1251_v25  ;;  %821 = vrsqrt.f32 %v1281_v31  ;;  %v183_v33 = vand.u32 2147483648, %v1279_v28 }
  0xac   :  { %823 = vrcp.f32 %v218_v39  ;;  %v153_v60 = vsel %vm152_vm14, %v1249_v20, %v151_v45  ;;  %vm173_vm10 = vcmp.eq.f32.partialorder %v1281_v31, inf  ;;  %vm175_vm11 = vcmp.eq.f32.partialorder %v1281_v31, 0.0 }
  0xad   :  { %v808_v47 = vpop.eup %807  ;;  %825 = vrcp.f32 %v217_v34  ;;  %v156_v52 = vsel %vm154_vm15, %v155_v6, %v153_v60  ;;  %v146_v3 = vsel %vm145_vm0, %v1251_v25, %v144_v48  ;;  %v176_v38 = vand.u32 2147483648, %v1281_v31 }
  0xae   :  { %v810_v13 = vpop.eup %809  ;;  %v220_v14 = vmax.f32 %v156_v52, 1e-12  ;;  %v149_v26 = vsel %vm147_vm2, %v148_v19, %v146_v3  ;;  %v165_v32 = vmul.f32 %v808_v47, %v1264_v43  ;;  %827 = vrsqrt.f32 %v1301_v46  ;;  %v1324_v55 = vpop.xlane.xlu1 %99 }
  0xaf   :  { %v1326_v20 = vpop.xlane.xlu0 %96  ;;  %v812_v6 = vpop.eup %811  ;;  %v265_v56 = vmul.f32 %v810_v13, %v1245_v63  ;;  %v219_v27 = vmax.f32 %v149_v26, 1e-12  ;;  %vm194_vm12 = vcmp.eq.f32.partialorder %v1301_v46, inf  ;;  %vm196_vm13 = vcmp.eq.f32.partialorder %v1301_v46, 0.0 }
  0xb0   :  { %v814_v25 = vpop.eup %813  ;;  %v263_v19 = vmul.f32 %v812_v6, %v1245_v63  ;;  %829 = vrcp.f32 %v220_v14  ;;  %v167_v37 = vsel %vm166_vm3, %v1264_v43, %v165_v32  ;;  %vm187_vm14 = vcmp.eq.f32.partialorder %v1303_v59, inf }
  0xb1   :  { %v281_v39 = vmul.f32 %v265_v56, %v953_v0  ;;  %831 = vrcp.f32 %v219_v27  ;;  %v170_v40 = vsel %vm168_vm4, %v169_v51, %v167_v37  ;;  %v158_v45 = vmul.f32 %v814_v25, %v1266_v44 }
  0xb2   :  { %v816_v34 = vpop.eup %815  ;;  %v279_v48 = vmul.f32 %v263_v19, %v958_v1  ;;  %v222_v60 = vmax.f32 %v170_v40, 1e-12  ;;  %833 = vrsqrt.f32 %v1303_v59  ;;  %v1345_v47 = vpop.xlane.xlu1 %397  ;;  %v197_v1 = vand.u32 2147483648, %v1301_v46 }
  0xb3   :  { %v1347_v52 = vpop.xlane.xlu0 %394  ;;  %v818_v3 = vpop.eup %817  ;;  %v774_v0 = vpack.c.bf16 %v281_v39, %v281_v39  ;;  %v266_v13 = vmul.f32 %v816_v34, %v1245_v63  ;;  %v160_v43 = vsel %vm159_vm6, %v1266_v44, %v158_v45  ;;  %v190_v37 = vand.u32 2147483648, %v1303_v59 }
  0xb4   :  { %v820_v51 = vpop.eup %819  ;;  %v772_v14 = vpack.c.bf16 %v279_v48, %v279_v48  ;;  %v264_v26 = vmul.f32 %v818_v3, %v1245_v63  ;;  %835 = vrcp.f32 %v222_v60  ;;  %v163_v32 = vsel %vm161_vm7, %v162_v8, %v160_v43 }
  0xb5   :  { %v822_v6 = vpop.eup %821  ;;  %362 = vst.msk [vmem:[%s1707_s4 + $0x8] sm:$0xf] %vm359_vm5, %v774_v0  ;;  %v282_v56 = vmul.f32 %v266_v13, %v963_v2  ;;  %v221_v27 = vmax.f32 %v163_v32, 1e-12  ;;  %v179_v25 = vmul.f32 %v820_v51, %v1279_v28  ;;  %837 = vrsqrt.f32 %v1324_v55 }
  0xb6   :  { %v824_v19 = vpop.eup %823  ;;  %360 = vst.msk [vmem:[%s1707_s4] sm:$0xf] %vm359_vm5, %v772_v14  ;;  %v280_v44 = vmul.f32 %v264_v26, %v974_v7  ;;  %v172_v8 = vmul.f32 %v822_v6, %v1281_v31  ;;  %v1373_v2 = vpop.xlane.xlu1 %403  ;;  %vm189_vm15 = vcmp.eq.f32.partialorder %v1303_v59, 0.0  ;;  %vm208_vm0 = vcmp.eq.f32.partialorder %v1324_v55, inf }
  0xb7   :  { %v1375_v39 = vpop.xlane.xlu0 %400  ;;  %v826_v40 = vpop.eup %825  ;;  %v775_v45 = vpack.c.bf16 %v282_v56, %v282_v56  ;;  %v268_v34 = vmul.f32 %v824_v19, %v1245_v63  ;;  %839 = vrcp.f32 %v221_v27  ;;  %v181_v48 = vsel %vm180_vm8, %v1279_v28, %v179_v25 }
  0xb8   :  { %v828_v7 = vpop.eup %827  ;;  %v773_v60 = vpack.c.bf16 %v280_v44, %v280_v44  ;;  %v267_v3 = vmul.f32 %v826_v40, %v1245_v63  ;;  %v184_v0 = vsel %vm182_vm9, %v183_v33, %v181_v48  ;;  %v174_v13 = vsel %vm173_vm10, %v1281_v31, %v172_v8 }
  0xb9   :  { %363 = vst.msk [vmem:[%s1707_s4 + $0xc] sm:$0xf] %vm359_vm5, %v775_v45  ;;  %v284_v43 = vmul.f32 %v268_v34, %v981_v9  ;;  %v224_v51 = vmax.f32 %v184_v0, 1e-12  ;;  %v177_v14 = vsel %vm175_vm11, %v176_v38, %v174_v13  ;;  %v193_v26 = vmul.f32 %v828_v7, %v1301_v46 }
  0xba   :  { %v830_v28 = vpop.eup %829  ;;  %361 = vst.msk [vmem:[%s1707_s4 + $0x4] sm:$0xf] %vm359_vm5, %v773_v60  ;;  %v283_v33 = vmul.f32 %v267_v3, %v986_v10  ;;  %v223_v32 = vmax.f32 %v177_v14, 1e-12  ;;  %vm210_vm2 = vcmp.eq.f32.partialorder %v1324_v55, 0.0  ;;  %841 = vrsqrt.f32 %v1326_v20  ;;  %v410_v9 = vpop.xlane.xlu1 %409 }
  0xbb   :  { %v407_v31 = vpop.xlane.xlu0 %406  ;;  %v832_v38 = vpop.eup %831  ;;  %v777_v6 = vpack.c.bf16 %v284_v43, %v284_v43  ;;  %v270_v56 = vmul.f32 %v830_v28, %v1245_v63  ;;  %843 = vrcp.f32 %v224_v51  ;;  %v195_v27 = vsel %vm194_vm12, %v1301_v46, %v193_v26 }
  0xbc   :  { %v834_v25 = vpop.eup %833  ;;  %v776_v19 = vpack.c.bf16 %v283_v33, %v283_v33  ;;  %v269_v10 = vmul.f32 %v832_v38, %v1245_v63  ;;  %845 = vrcp.f32 %v223_v32  ;;  %v198_v44 = vsel %vm196_vm13, %v197_v1, %v195_v27 }
  0xbd   :  { %365 = vst.msk [vmem:[%s1707_s4 + $0x14] sm:$0xf] %vm359_vm5, %v777_v6  ;;  %v286_v8 = vmul.f32 %v270_v56, %v999_v17  ;;  %v226_v40 = vmax.f32 %v198_v44, 1e-12  ;;  %v186_v45 = vmul.f32 %v834_v25, %v1303_v59  ;;  %v211_v34 = vand.u32 2147483648, %v1324_v55 }
  0xbe   :  { %v836_v48 = vpop.eup %835  ;;  %364 = vst.msk [vmem:[%s1707_s4 + $0x10] sm:$0xf] %vm359_vm5, %v776_v19  ;;  %v285_v46 = vmul.f32 %v269_v10, %v1004_v18  ;;  %vm201_vm3 = vcmp.eq.f32.partialorder %v1326_v20, inf  ;;  %v204_v1 = vand.u32 2147483648, %v1326_v20  ;;  %v1427_v17 = vsub.f32 %v1081_v49, %v1345_v47  ;;  %v416_v7 = vpop.xlane.xlu1 %415 }
  0xbf   :  { %v413_v60 = vpop.xlane.xlu0 %412  ;;  %v838_v3 = vpop.eup %837  ;;  %v779_v0 = vpack.c.bf16 %v286_v8, %v286_v8  ;;  %v272_v13 = vmul.f32 %v836_v48, %v1245_v63  ;;  %847 = vrcp.f32 %v226_v40  ;;  %v188_v43 = vsel %vm187_vm14, %v1303_v59, %v186_v45 }
  0xc0   :  { %vm203_vm4 = vcmp.eq.f32.partialorder %v1326_v20, 0.0  ;;  %v778_v18 = vpack.c.bf16 %v285_v46, %v285_v46  ;;  %v191_v51 = vsel %vm189_vm15, %v190_v37, %v188_v43  ;;  %v207_v49 = vmul.f32 %v838_v3, %v1324_v55 }
  0xc1   :  { %v459_v47 = vmul.f32 1.442695, %v1427_v17  ;;  %v840_v14 = vpop.eup %839  ;;  %367 = vst.msk [vmem:[%s1707_s4 + $0x1c] sm:$0xf] %vm359_vm5, %v779_v0  ;;  %v288_v26 = vmul.f32 %v272_v13, %v1015_v23  ;;  %v225_v28 = vmax.f32 %v191_v51, 1e-12  ;;  %v1445_v33 = vsub.f32 %v1086_v50, %v1347_v52 }
  0xc2   :  { %v1449_v59 = vsub.f32 %v1095_v53, %v1373_v2  ;;  %366 = vst.msk [vmem:[%s1707_s4 + $0x18] sm:$0xf] %vm359_vm5, %v778_v18  ;;  %v271_v37 = vmul.f32 %v840_v14, %v1245_v63  ;;  %v209_v23 = vsel %vm208_vm0, %v1324_v55, %v207_v49  ;;  %v1461_v50 = vsub.f32 %v1100_v54, %v1375_v39  ;;  %v422_v52 = vpop.xlane.xlu1 %421 }
  0xc3   :  { %849 = vpow2.f32 %v459_v47  ;;  %v781_v32 = vpack.c.bf16 %v288_v26, %v288_v26  ;;  %v212_v53 = vsel %vm210_vm2, %v211_v34, %v209_v23  ;;  %v457_v2 = vmul.f32 1.442695, %v1445_v33  ;;  %v419_v19 = vpop.xlane.xlu0 %418 }
  0xc4   :  { %851 = vrcp.f32 %v225_v28  ;;  %v842_v38 = vpop.eup %841  ;;  %v287_v6 = vmul.f32 %v271_v37, %v1020_v24  ;;  %v228_v56 = vmax.f32 %v212_v53, 1e-12  ;;  %v463_v27 = vmul.f32 1.442695, %v1449_v59 }
  0xc5   :  { %v461_v25 = vmul.f32 1.442695, %v1461_v50  ;;  %v844_v10 = vpop.eup %843  ;;  %369 = vst.msk [vmem:[%s1707_s4 + $0x24] sm:$0xf] %vm359_vm5, %v781_v32  ;;  %v200_v54 = vmul.f32 %v842_v38, %v1326_v20  ;;  %853 = vpow2.f32 %v457_v2  ;;  %v1475_v55 = vsub.f32 %v1109_v57, %v410_v9 }
  0xc6   :  { %v1478_v24 = vsub.f32 %v1114_v58, %v407_v31  ;;  %v846_v39 = vpop.eup %845  ;;  %v780_v44 = vpack.c.bf16 %v287_v6, %v287_v6  ;;  %v274_v8 = vmul.f32 %v844_v10, %v1245_v63  ;;  %855 = vrcp.f32 %v228_v56  ;;  %v428_v45 = vpop.xlane.xlu1 %427 }
  0xc7   :  { %v1482_v40 = vsub.f32 %v1123_v61, %v416_v7  ;;  %v273_v34 = vmul.f32 %v846_v39, %v1245_v63  ;;  %v202_v48 = vsel %vm201_vm3, %v1326_v20, %v200_v54  ;;  %857 = vpow2.f32 %v463_v27 }
  0xc8   :  { %v467_v57 = vmul.f32 1.442695, %v1475_v55  ;;  %368 = vst.msk [vmem:[%s1707_s4 + $0x20] sm:$0xf] %vm359_vm5, %v780_v44  ;;  %v290_v58 = vmul.f32 %v274_v8, %v1031_v29  ;;  %v205_v61 = vsel %vm203_vm4, %v204_v1, %v202_v48  ;;  %859 = vpow2.f32 %v461_v25  ;;  %v425_v29 = vpop.xlane.xlu0 %424 }
  0xc9   :  { %v465_v9 = vmul.f32 1.442695, %v1478_v24  ;;  %v848_v31 = vpop.eup %847  ;;  %v289_v46 = vmul.f32 %v273_v34, %v1036_v30  ;;  %v227_v7 = vmax.f32 %v205_v61, 1e-12  ;;  %v471_v3 = vmul.f32 1.442695, %v1482_v40 }
  0xca   :  { %861 = vpow2.f32 %v467_v57  ;;  %v783_v0 = vpack.c.bf16 %v290_v58, %v290_v58  ;;  %v276_v13 = vmul.f32 %v848_v31, %v1245_v63  ;;  %v1501_v43 = vsub.f32 %v1128_v62, %v413_v60  ;;  %v434_v20 = vpop.xlane.xlu1 %433 }
  0xcb   :  { %863 = vpow2.f32 %v465_v9  ;;  %v782_v1 = vpack.c.bf16 %v289_v46, %v289_v46  ;;  %v1504_v18 = vsub.f32 %v1142_v5, %v419_v19  ;;  %v1519_v47 = vsub.f32 %v1156_v12, %v425_v29 }
  0xcc   :  { %865 = vrcp.f32 %v227_v7  ;;  %371 = vst.msk [vmem:[%s1707_s4 + $0x2c] sm:$0xf] %vm359_vm5, %v783_v0  ;;  %v292_v30 = vmul.f32 %v276_v13, %v1047_v35  ;;  %v469_v49 = vmul.f32 1.442695, %v1501_v43  ;;  %v1523_v35 = vsub.f32 %v1137_v4, %v422_v52  ;;  %v431_v2 = vpop.xlane.xlu0 %430 }
  0xcd   :  { %v850_v51 = vpop.eup %849  ;;  %867 = vpow2.f32 %v471_v3  ;;  %370 = vst.msk [vmem:[%s1707_s4 + $0x28] sm:$0xf] %vm359_vm5, %v782_v1  ;;  %v473_v5 = vmul.f32 1.442695, %v1504_v18  ;;  %v477_v23 = vmul.f32 1.442695, %v1519_v47  ;;  %v1527_v32 = vsub.f32 %v1165_v15, %v434_v20 }
  0xce   :  { %v852_v62 = vpop.eup %851  ;;  %v492_v60 = vsel %vm392_vm1, %v850_v51, 0.0  ;;  %v785_v14 = vpack.c.bf16 %v292_v30, %v292_v30  ;;  %869 = vpow2.f32 %v469_v49  ;;  %v440_v28 = vpop.xlane.xlu1 %439  ;;  %v1540_v15 = vsub.f32 %v1151_v11, %v428_v45 }
  0xcf   :  { %v275_v26 = vmul.f32 %v852_v62, %v1245_v63  ;;  %493 = vadd.xlane.f32.xlu1 %v492_v60  ;;  %v854_v37 = vpop.eup %853  ;;  %v1530_v53 = vsub.f32 %v1179_v21, %v440_v28  ;;  %871 = vpow2.f32 %v473_v5  ;;  %v483_v21 = vmul.f32 1.442695, %v1527_v32 }
  0xd0   :  { %v856_v12 = vpop.eup %855  ;;  %373 = vst.msk [vmem:[%s1707_s4 + $0x34] sm:$0xf] %vm359_vm5, %v785_v14  ;;  %v489_v52 = vsel %vm392_vm1, %v854_v37, 0.0  ;;  %v475_v25 = vmul.f32 1.442695, %v1523_v35  ;;  %873 = vpow2.f32 %v477_v23  ;;  %v1556_v48 = vsub.f32 %v1170_v16, %v431_v2  ;;  %v437_v61 = vpop.xlane.xlu0 %436 }
  0xd1   :  { %v291_v4 = vmul.f32 %v275_v26, %v1052_v36  ;;  %v858_v38 = vpop.eup %857  ;;  %v278_v6 = vmul.f32 %v856_v12, %v1245_v63  ;;  %490 = vadd.xlane.f32.xlu0 %v489_v52  ;;  %875 = vpow2.f32 %v483_v21  ;;  %v487_v11 = vmul.f32 1.442695, %v1530_v53 }
  0xd2   :  { %v860_v56 = vpop.eup %859  ;;  %v498_v36 = vsel %vm392_vm1, %v858_v38, 0.0  ;;  %v1545_v19 = vpop.permute.xlu1 %588  ;;  %877 = vpow2.f32 %v475_v25  ;;  %v479_v31 = vmul.f32 1.442695, %v1540_v15  ;;  %v481_v7 = vmul.f32 1.442695, %v1556_v48 }
  0xd3   :  { %v784_v27 = vpack.c.bf16 %v291_v4, %v291_v4  ;;  %v294_v54 = vmul.f32 %v278_v6, %v1063_v41  ;;  %v495_v39 = vsel %vm392_vm1, %v860_v56, 0.0  ;;  %499 = vadd.xlane.f32.xlu1 %v498_v36  ;;  %879 = vpow2.f32 %v487_v11 }
  0xd4   :  { %v862_v10 = vpop.eup %861  ;;  %v1571_v3 = vsub.f32 %v1184_v22, %v437_v61  ;;  %881 = vpow2.f32 %v479_v31  ;;  %v585_v30 = vlaneseq }
  0xd5   :  { %v864_v44 = vpop.eup %863  ;;  %372 = vst.msk [vmem:[%s1707_s4 + $0x30] sm:$0xf] %vm359_vm5, %v784_v27  ;;  %v504_v8 = vsel %vm392_vm1, %v862_v10, 0.0  ;;  %v787_v34 = vpack.c.bf16 %v294_v54, %v294_v54  ;;  %496 = vadd.xlane.f32.xlu0 %v495_v39  ;;  %883 = vpow2.f32 %v481_v7 }
  0xd6   :  { %v866_v45 = vpop.eup %865  ;;  %v501_v58 = vsel %vm392_vm1, %v864_v44, 0.0  ;;  %v1560_v9 = vpop.permute.xlu1 %594  ;;  %v485_v51 = vmul.f32 1.442695, %v1571_v3  ;;  %v1582_v28 = vand.u32 127, %v585_v30 }
  0xd7   :  { %v868_v41 = vpop.eup %867  ;;  %v277_v57 = vmul.f32 %v866_v45, %v1245_v63  ;;  %375 = vst.msk [vmem:[%s1707_s4 + $0x3c] sm:$0xf] %vm359_vm5, %v787_v34  ;;  %505 = vadd.xlane.f32.xlu1 %v504_v8  ;;  %v592_v26 = vpop.permute.xlu0 %591 }
  0xd8   :  { %v870_v16 = vpop.eup %869  ;;  %v510_v63 = vsel %vm392_vm1, %v868_v41, 0.0  ;;  %885 = vpow2.f32 %v485_v51  ;;  %vm635_vm8 = vcmp.eq.s32.totalorder %v1582_v28, %v1545_v19  ;;  %vm637_vm10 = vcmp.eq.s32.totalorder %v1582_v28, %v1560_v9 }
  0xd9   :  { %v293_v46 = vmul.f32 %v277_v57, %v1068_v42  ;;  %502 = vadd.xlane.f32.xlu0 %v501_v58  ;;  %v507_v13 = vsel %vm392_vm1, %v870_v16, 0.0  ;;  %v872_v20 = vpop.eup %871  ;;  %v651_v11 = vsel %vm635_vm8, %v1445_v33, 0.0 }
  0xda   :  { %v598_v29 = vpop.permute.xlu1 %597  ;;  %v874_v1 = vpop.eup %873  ;;  %v513_v49 = vsel %vm392_vm1, %v872_v20, 0.0  ;;  %v667_v8 = vsel %vm392_vm1, %v651_v11, 0.0 }
  0xdb   :  { %v786_v0 = vpack.c.bf16 %v293_v46, %v293_v46  ;;  %511 = vadd.xlane.f32.xlu1 %v510_v63  ;;  %v876_v42 = vpop.eup %875  ;;  %v519_v22 = vsel %vm392_vm1, %v874_v1, 0.0  ;;  %vm638_vm6 = vcmp.eq.s32.totalorder %v1582_v28, %v598_v29  ;;  %v619_v61 = vpop.permute.xlu0 %618 }
  0xdc   :  { %v878_v5 = vpop.eup %877  ;;  %v528_v60 = vsel %vm392_vm1, %v876_v42, 0.0  ;;  %v654_v36 = vsel %vm638_vm6, %v1449_v59, 0.0  ;;  %vm645_vm3 = vcmp.eq.s32.totalorder %v1582_v28, %v619_v61 }
  0xdd   :  { %374 = vst.msk [vmem:[%s1707_s4 + $0x38] sm:$0xf] %vm359_vm5, %v786_v0  ;;  %508 = vadd.xlane.f32.xlu0 %v507_v13  ;;  %v880_v14 = vpop.eup %879  ;;  %vm636_vm5 = vcmp.eq.s32.totalorder %v1582_v28, %v592_v26  ;;  %v516_v23 = vsel %vm392_vm1, %v878_v5, 0.0  ;;  %v676_v10 = vsel %vm392_vm1, %v654_v36, 0.0  ;;  %v661_v13 = vsel %vm645_vm3, %v1519_v47, 0.0 }
  0xde   :  { %v601_v62 = vpop.permute.xlu1 %600  ;;  %v534_v12 = vsel %vm392_vm1, %v880_v14, 0.0  ;;  %v882_v4 = vpop.eup %881  ;;  %v652_v38 = vsel %vm636_vm5, %v1427_v17, 0.0  ;;  %v697_v20 = vsel %vm392_vm1, %v661_v13, 0.0 }
  0xdf   :  { %520 = vadd.xlane.f32.xlu1 %v519_v22  ;;  %v884_v2 = vpop.eup %883  ;;  %v522_v6 = vsel %vm392_vm1, %v882_v4, 0.0  ;;  %v670_v56 = vsel %vm392_vm1, %v652_v38, 0.0  ;;  %vm639_vm12 = vcmp.eq.s32.totalorder %v1582_v28, %v601_v62  ;;  %v625_v63 = vpop.permute.xlu0 %624 }
  0xe0   :  { %v525_v21 = vsel %vm392_vm1, %v884_v2, 0.0  ;;  %v655_v57 = vsel %vm639_vm12, %v1478_v24, 0.0  ;;  %vm647_vm4 = vcmp.eq.s32.totalorder %v1582_v28, %v625_v63 }
  0xe1   :  { %514 = vadd.xlane.f32.xlu0 %v513_v49 }
  0xe2   :  { %v604_v37 = vpop.permute.xlu1 %603  ;;  %v886_v25 = vpop.eup %885 }
  0xe3   :  { %529 = vadd.xlane.f32.xlu1 %v528_v60  ;;  %vm640_vm7 = vcmp.eq.s32.totalorder %v1582_v28, %v604_v37  ;;  %v531_v17 = vsel %vm392_vm1, %v886_v25, 0.0  ;;  %v631_v29 = vpop.permute.xlu0 %630 }
  0xe4   :  { %v656_v39 = vsel %vm640_vm7, %v1475_v55, 0.0  ;;  %v653_v55 = vsel %vm637_vm10, %v1461_v50, 0.0  ;;  %vm649_vm5 = vcmp.eq.s32.totalorder %v1582_v28, %v631_v29 }
  0xe5   :  { %517 = vadd.xlane.f32.xlu0 %v516_v23  ;;  %v682_v19 = vsel %vm392_vm1, %v656_v39, 0.0  ;;  %v673_v34 = vsel %vm392_vm1, %v653_v55, 0.0  ;;  %v665_v1 = vsel %vm649_vm5, %v1571_v3, 0.0 }
  0xe6   :  { %v607_v52 = vpop.permute.xlu1 %606  ;;  %v709_v42 = vsel %vm392_vm1, %v665_v1, 0.0 }
  0xe7   :  { %535 = vadd.xlane.f32.xlu1 %v534_v12  ;;  %vm641_vm14 = vcmp.eq.s32.totalorder %v1582_v28, %v607_v52 }
  0xe8   :  { %v657_v31 = vsel %vm641_vm14, %v1501_v43, 0.0 }
  0xe9   :  { %523 = vadd.xlane.f32.xlu0 %v522_v6 }
  0xea   :  { %v610_v27 = vpop.permute.xlu1 %609 }
  0xeb   :  { %671 = vadd.xlane.f32.xlu1 %v670_v56  ;;  %vm642_vm9 = vcmp.eq.s32.totalorder %v1582_v28, %v610_v27 }
  0xec   :  { %v658_v59 = vsel %vm642_vm9, %v1482_v40, 0.0 }
  0xed   :  { %526 = vadd.xlane.f32.xlu0 %v525_v21  ;;  %v688_v45 = vsel %vm392_vm1, %v658_v59, 0.0 }
  0xee   :  { %v613_v54 = vpop.permute.xlu1 %612 }
  0xef   :  { %677 = vadd.xlane.f32.xlu1 %v676_v10  ;;  %vm643_vm0 = vcmp.eq.s32.totalorder %v1582_v28, %v613_v54 }
  0xf0   :  { %v659_v7 = vsel %vm643_vm0, %v1504_v18, 0.0  ;;  %v663_v18 = vsel %vm647_vm4, %v1556_v48, 0.0 }
  0xf1   :  { %532 = vadd.xlane.f32.xlu0 %v531_v17  ;;  %v691_v43 = vsel %vm392_vm1, %v659_v7, 0.0 }
  0xf2   :  { %v616_v44 = vpop.permute.xlu1 %615 }
  0xf3   :  { %683 = vadd.xlane.f32.xlu1 %v682_v19  ;;  %vm644_vm11 = vcmp.eq.s32.totalorder %v1582_v28, %v616_v44 }
  0xf4   :  { %v660_v33 = vsel %vm644_vm11, %v1523_v35, 0.0  ;;  %v679_v35 = vsel %vm392_vm1, %v655_v57, 0.0 }
  0xf5   :  { %668 = vadd.xlane.f32.xlu0 %v667_v8  ;;  %v694_v41 = vsel %vm392_vm1, %v660_v33, 0.0 }
  0xf6   :  { %v622_v40 = vpop.permute.xlu1 %621 }
  0xf7   :  { %689 = vadd.xlane.f32.xlu1 %v688_v45  ;;  %vm646_vm13 = vcmp.eq.s32.totalorder %v1582_v28, %v622_v40 }
  0xf8   :  { %v662_v58 = vsel %vm646_vm13, %v1540_v15, 0.0  ;;  %v685_v15 = vsel %vm392_vm1, %v657_v31, 0.0 }
  0xf9   :  { %674 = vadd.xlane.f32.xlu0 %v673_v34  ;;  %v700_v9 = vsel %vm392_vm1, %v662_v58, 0.0 }
  0xfa   :  { %v628_v50 = vpop.permute.xlu1 %627 }
  0xfb   :  { %695 = vadd.xlane.f32.xlu1 %v694_v41  ;;  %vm648_vm15 = vcmp.eq.s32.totalorder %v1582_v28, %v628_v50 }
  0xfc   :  { %v664_v16 = vsel %vm648_vm15, %v1527_v32, 0.0 }
  0xfd   :  { %680 = vadd.xlane.f32.xlu0 %v679_v35  ;;  %v706_v46 = vsel %vm392_vm1, %v664_v16, 0.0 }
  0xfe   :  { %v634_v24 = vpop.permute.xlu1 %633 }
  0xff   :  { %701 = vadd.xlane.f32.xlu1 %v700_v9  ;;  %vm650_vm2 = vcmp.eq.s32.totalorder %v1582_v28, %v634_v24 }
 0x100   :  { %v666_v0 = vsel %vm650_vm2, %v1530_v53, 0.0  ;;  %v703_v53 = vsel %vm392_vm1, %v663_v18, 0.0 }
 0x101   :  { %686 = vadd.xlane.f32.xlu0 %v685_v15  ;;  %v712_v32 = vsel %vm392_vm1, %v666_v0, 0.0  ;;  %vm731_vm1 = vcmask 7168  }
 0x103   :  { %707 = vadd.xlane.f32.xlu1 %v706_v46 }
 0x105   :  { %692 = vadd.xlane.f32.xlu0 %v691_v43 }
 0x107   :  { %713 = vadd.xlane.f32.xlu1 %v712_v32 }
 0x109   :  { %698 = vadd.xlane.f32.xlu0 %v697_v20 }
 0x10d   :  { %704 = vadd.xlane.f32.xlu0 %v703_v53 }
 0x111   :  { %710 = vadd.xlane.f32.xlu0 %v709_v42 }
 0x15c   :  { %v494_v47 = vpop.xlane.xlu1 %493 }
 0x15d   :  { %887 = vlog2.f32 %v494_v47 }
 0x15e   :  { %v491_v51 = vpop.xlane.xlu0 %490 }
 0x160   :  { %v500_v22 = vpop.xlane.xlu1 %499 }
 0x161   :  { %889 = vlog2.f32 %v500_v22 }
 0x162   :  { %v497_v30 = vpop.xlane.xlu0 %496 }
 0x164   :  { %v506_v49 = vpop.xlane.xlu1 %505 }
 0x165   :  { %891 = vlog2.f32 %v506_v49 }
 0x166   :  { %v503_v62 = vpop.xlane.xlu0 %502  ;;  %893 = vlog2.f32 %v491_v51 }
 0x167   :  { %v888_v37 = vpop.eup %887 }
 0x168   :  { %v512_v5 = vpop.xlane.xlu1 %511  ;;  %v540_v12 = vmul.f32 0.6931472, %v888_v37 }
 0x169   :  { %895 = vlog2.f32 %v512_v5 }
 0x16a   :  { %v509_v60 = vpop.xlane.xlu0 %508  ;;  %897 = vlog2.f32 %v497_v30 }
 0x16b   :  { %v890_v4 = vpop.eup %889 }
 0x16c   :  { %v521_v48 = vpop.xlane.xlu1 %520  ;;  %v544_v6 = vmul.f32 0.6931472, %v890_v4 }
 0x16e   :  { %v515_v14 = vpop.xlane.xlu0 %514 }
 0x16f   :  { %v892_v21 = vpop.eup %891 }
 0x170   :  { %v530_v26 = vpop.xlane.xlu1 %529  ;;  %v894_v25 = vpop.eup %893  ;;  %v548_v17 = vmul.f32 0.6931472, %v892_v21 }
 0x171   :  { %v538_v39 = vmul.f32 0.6931472, %v894_v25 }
 0x172   :  { %v518_v28 = vpop.xlane.xlu0 %517 }
 0x173   :  { %899 = vlog2.f32 %v518_v28  ;;  %v896_v10 = vpop.eup %895 }
 0x174   :  { %v536_v3 = vpop.xlane.xlu1 %535  ;;  %901 = vlog2.f32 %v503_v62  ;;  %v898_v59 = vpop.eup %897  ;;  %v552_v8 = vmul.f32 0.6931472, %v896_v10 }
 0x175   :  { %v542_v33 = vmul.f32 0.6931472, %v898_v59 }
 0x176   :  { %v524_v23 = vpop.xlane.xlu0 %523 }
 0x177   :  { %903 = vlog2.f32 %v524_v23 }
 0x178   :  { %v672_v52 = vpop.xlane.xlu1 %671  ;;  %905 = vlog2.f32 %v509_v60 }
 0x179   :  { %v716_v2 = vsub.f32 %v540_v12, %v672_v52  ;;  %907 = vlog2.f32 %v530_v26 }
 0x17a   :  { %v527_v38 = vpop.xlane.xlu0 %526  ;;  %909 = vlog2.f32 %v515_v14 }
 0x17b   :  { %733 = vst.msk [vmem:[%s1708_s5 + $0x8] sm:$0xff] %vm731_vm1, %v716_v2  ;;  %911 = vlog2.f32 %v536_v3 }
 0x17c   :  { %v678_v56 = vpop.xlane.xlu1 %677  ;;  %913 = vlog2.f32 %v521_v48 }
 0x17d   :  { %v718_v27 = vsub.f32 %v544_v6, %v678_v56  ;;  %v900_v45 = vpop.eup %899  ;;  %915 = vlog2.f32 %v527_v38 }
 0x17e   :  { %v533_v36 = vpop.xlane.xlu0 %532  ;;  %v902_v34 = vpop.eup %901  ;;  %v556_v58 = vmul.f32 0.6931472, %v900_v45 }
 0x17f   :  { %735 = vst.msk [vmem:[%s1708_s5 + $0x18] sm:$0xff] %vm731_vm1, %v718_v27  ;;  %v546_v35 = vmul.f32 0.6931472, %v902_v34  ;;  %917 = vlog2.f32 %v533_v36 }
 0x180   :  { %v684_v54 = vpop.xlane.xlu1 %683 }
 0x181   :  { %v720_v11 = vsub.f32 %v548_v17, %v684_v54  ;;  %v904_v50 = vpop.eup %903 }
 0x182   :  { %v669_v19 = vpop.xlane.xlu0 %668  ;;  %v906_v31 = vpop.eup %905  ;;  %v560_v15 = vmul.f32 0.6931472, %v904_v50 }
 0x183   :  { %v715_v44 = vsub.f32 %v538_v39, %v669_v19  ;;  %737 = vst.msk [vmem:[%s1708_s5 + $0x28] sm:$0xff] %vm731_vm1, %v720_v11  ;;  %v908_v46 = vpop.eup %907  ;;  %v550_v7 = vmul.f32 0.6931472, %v906_v31 }
 0x184   :  { %v690_v55 = vpop.xlane.xlu1 %689  ;;  %v910_v43 = vpop.eup %909  ;;  %v564_v29 = vmul.f32 0.6931472, %v908_v46 }
 0x185   :  { %732 = vst.msk [vmem:[%s1708_s5] sm:$0xff] %vm731_vm1, %v715_v44  ;;  %v722_v40 = vsub.f32 %v552_v8, %v690_v55  ;;  %v912_v20 = vpop.eup %911  ;;  %v554_v53 = vmul.f32 0.6931472, %v910_v43 }
 0x186   :  { %v675_v41 = vpop.xlane.xlu0 %674  ;;  %v914_v42 = vpop.eup %913  ;;  %v568_v22 = vmul.f32 0.6931472, %v912_v20 }
 0x187   :  { %v717_v57 = vsub.f32 %v542_v33, %v675_v41  ;;  %739 = vst.msk [vmem:[%s1708_s5 + $0x38] sm:$0xff] %vm731_vm1, %v722_v40  ;;  %v558_v49 = vmul.f32 0.6931472, %v914_v42  ;;  %v916_v5 = vpop.eup %915 }
 0x188   :  { %v696_v61 = vpop.xlane.xlu1 %695  ;;  %v562_v14 = vmul.f32 0.6931472, %v916_v5 }
 0x189   :  { %734 = vst.msk [vmem:[%s1708_s5 + $0x10] sm:$0xff] %vm731_vm1, %v717_v57  ;;  %v724_v9 = vsub.f32 %v556_v58, %v696_v61  ;;  %v918_v26 = vpop.eup %917 }
 0x18a   :  { %v681_v16 = vpop.xlane.xlu0 %680  ;;  %v566_v3 = vmul.f32 0.6931472, %v918_v26 }
 0x18b   :  { %v719_v24 = vsub.f32 %v546_v35, %v681_v16  ;;  %741 = vst.msk [vmem:[%s1708_s5 + $0x48] sm:$0xff] %vm731_vm1, %v724_v9 }
 0x18c   :  { %v702_v63 = vpop.xlane.xlu1 %701 }
 0x18d   :  { %736 = vst.msk [vmem:[%s1708_s5 + $0x20] sm:$0xff] %vm731_vm1, %v719_v24  ;;  %v726_v0 = vsub.f32 %v560_v15, %v702_v63 }
 0x18e   :  { %v687_v32 = vpop.xlane.xlu0 %686 }
 0x18f   :  { %v721_v13 = vsub.f32 %v550_v7, %v687_v32  ;;  %743 = vst.msk [vmem:[%s1708_s5 + $0x58] sm:$0xff] %vm731_vm1, %v726_v0 }
 0x190   :  { %v708_v18 = vpop.xlane.xlu1 %707 }
 0x191   :  { %738 = vst.msk [vmem:[%s1708_s5 + $0x30] sm:$0xff] %vm731_vm1, %v721_v13  ;;  %v728_v1 = vsub.f32 %v564_v29, %v708_v18 }
 0x192   :  { %v693_v47 = vpop.xlane.xlu0 %692 }
 0x193   :  { %v723_v51 = vsub.f32 %v554_v53, %v693_v47  ;;  %745 = vst.msk [vmem:[%s1708_s5 + $0x68] sm:$0xff] %vm731_vm1, %v728_v1 }
 0x194   :  { %v714_v30 = vpop.xlane.xlu1 %713 }
 0x195   :  { %740 = vst.msk [vmem:[%s1708_s5 + $0x40] sm:$0xff] %vm731_vm1, %v723_v51  ;;  %v730_v62 = vsub.f32 %v568_v22, %v714_v30 }
 0x196   :  { %v699_v60 = vpop.xlane.xlu0 %698 }
 0x197   :  { %v725_v48 = vsub.f32 %v558_v49, %v699_v60  ;;  %747 = vst.msk [vmem:[%s1708_s5 + $0x78] sm:$0xff] %vm731_vm1, %v730_v62 }
 0x199   :  { %742 = vst.msk [vmem:[%s1708_s5 + $0x50] sm:$0xff] %vm731_vm1, %v725_v48 }
 0x19a   :  { %v705_v28 = vpop.xlane.xlu0 %704 }
 0x19b   :  { %v727_v37 = vsub.f32 %v562_v14, %v705_v28 }
 0x19d   :  { %744 = vst.msk [vmem:[%s1708_s5 + $0x60] sm:$0xff] %vm731_vm1, %v727_v37 }
 0x19e   :  { %v711_v23 = vpop.xlane.xlu0 %710 }
 0x19f   :  { %v729_v12 = vsub.f32 %v566_v3, %v711_v23 }
 0x1a1   :  { %746 = vst.msk [vmem:[%s1708_s5 + $0x70] sm:$0xff] %vm731_vm1, %v729_v12 }

</bundles_post_ra>
